<compile_context>
chip_gen: v6e
topology: v6e:2x2x1
jax: 0.10.0
libtpu: 0.0.40
codegen_flags: <defaults>
</compile_context>

<pallas_src>
import functools

import jax
import jax.numpy as jnp
import numpy as np
from jax.experimental import pallas as pl
from jax.experimental.pallas import tpu as pltpu

_LANE = 128
_TILE_ALIGN = 16  # bf16 packs 16 rows per sublane group


def _round_up(x, m):
    return ((x + m - 1) // m) * m


def actor_ppo_kernel(x_ref, w1_ref, w2_ref, w3_ref, w4_ref, b_ref, out_ref,
                     *, elem_bf16):
    """One batch tile of the 4-layer MLP.

    x_ref  : (tile_b, state_dim)           f32 (cast to bf16 in-kernel)
    w*_ref : lane-padded (in, out) weights  bf16 (padded rows/cols are zero)
    b_ref  : (8, PW) f32, rows 0..3 = b1..b4 (lane zero-padded)
    out_ref: (tile_b, out_pad) bf16, lane-dense padded action dim
    """
    cdt = jnp.bfloat16 if elem_bf16 else jnp.float32
    b = b_ref[...]
    x = x_ref[...].astype(jnp.bfloat16)   # in-kernel cast: no extra HBM pass

    # Linear 1 + ReLU  (bf16 operands, f32 accumulate on the MXU)
    h = jnp.dot(x, w1_ref[...], preferred_element_type=jnp.float32).astype(cdt)
    h = jnp.maximum(h + b[0:1, :h.shape[1]].astype(cdt), 0.0)

    # Linear 2 + ReLU
    h = jnp.dot(h.astype(jnp.bfloat16), w2_ref[...],
                preferred_element_type=jnp.float32).astype(cdt)
    h = jnp.maximum(h + b[1:2, :h.shape[1]].astype(cdt), 0.0)

    # Linear 3 + Hardswish: x * relu6(x + 3) / 6
    h = jnp.dot(h.astype(jnp.bfloat16), w3_ref[...],
                preferred_element_type=jnp.float32).astype(cdt)
    h = h + b[2:3, :h.shape[1]].astype(cdt)
    h = h * jnp.clip(h + 3.0, 0.0, 6.0) * (1.0 / 6.0)

    # Linear 4 + tanh (f32 bias/tanh; padded output lanes stay 0 -> tanh(0)=0)
    a = jnp.dot(h.astype(jnp.bfloat16), w4_ref[...],
                preferred_element_type=jnp.float32)
    a = a + b[3:4, :a.shape[1]]
    out_ref[...] = jnp.tanh(a).astype(out_ref.dtype)


def _elementwise_bf16_default():
    """bf16 VPU math only on chips with a native bf16 VPU (v6e / v7x)."""
    try:
        kind = jax.devices()[0].device_kind.lower()
    except Exception:
        return False
    return ("v6" in kind) or ("v7" in kind)


def actor_ppo_forward(state, kparams, *, tile_b=2048, elem_bf16=None):
    """state: [B, state_dim] float32. kparams: output of prepare_kernel_params.

    Returns [B, action_dim] bfloat16 (tanh output, bounded in [-1, 1]).
    """
    B, state_dim = state.shape
    w1, w2, w3, w4 = kparams["w1"], kparams["w2"], kparams["w3"], kparams["w4"]
    bias = kparams["bias"]
    action_dim = kparams["action_dim"]
    midp = w2.shape[0]
    outp = w4.shape[1]

    if elem_bf16 is None:
        elem_bf16 = _elementwise_bf16_default()

    # Pick the batch tile: multiple of 16, clamped to the batch, and (when the
    # batch is big enough to split) at least 2 grid steps so both v7x
    # TensorCores get work on the "parallel" axis.
    tile_b = max(_TILE_ALIGN, _round_up(tile_b, _TILE_ALIGN))
    b_al = _round_up(max(B, 1), _TILE_ALIGN)
    tile_b = min(tile_b, b_al)
    if b_al >= 2 * _TILE_ALIGN:
        tile_b = min(tile_b, _round_up(pl.cdiv(b_al, 2), _TILE_ALIGN))
    grid_b = pl.cdiv(B, tile_b)

    # VMEM budget for the chosen tile (double-buffered x/out blocks, resident
    # weights, and generous headroom for the f32/bf16 temporaries).
    w_bytes = (w1.size + w2.size + w3.size + w4.size) * 2 + bias.size * 4
    io_bytes = 2 * (tile_b * state_dim * 4 + tile_b * outp * 2)
    tmp_bytes = 6 * tile_b * midp * 4
    vmem_limit = int(1.25 * (2 * w_bytes + io_bytes + tmp_bytes))
    vmem_limit = min(64 * 1024 * 1024, max(8 * 1024 * 1024, vmem_limit))

    cost = pl.CostEstimate(
        flops=2 * B * (state_dim * midp + 2 * midp * midp + midp * outp),
        transcendentals=B * outp,
        bytes_accessed=B * state_dim * 4 + B * outp * 2 + w_bytes,
    )

    def full_spec(shape):
        return pl.BlockSpec(shape, lambda i: (0,) * len(shape))

    out = pl.pallas_call(
        functools.partial(actor_ppo_kernel, elem_bf16=elem_bf16),
        out_shape=jax.ShapeDtypeStruct((B, outp), jnp.bfloat16),
        grid_spec=pl.GridSpec(
            grid=(grid_b,),
            in_specs=[
                pl.BlockSpec((tile_b, state_dim), lambda i: (i, 0)),
                full_spec(w1.shape),
                full_spec(w2.shape),
                full_spec(w3.shape),
                full_spec(w4.shape),
                full_spec(bias.shape),
            ],
            out_specs=pl.BlockSpec((tile_b, outp), lambda i: (i, 0)),
        ),
        compiler_params=pltpu.CompilerParams(
            dimension_semantics=("parallel",),
            vmem_limit_bytes=vmem_limit),
        cost_estimate=cost,
    )(state, w1, w2, w3, w4, bias)

    # Slice off the lane-padded action columns (batch is not padded anymore).
    return out[:, :action_dim]


def init_params(key, state_dim, mid_dim, action_dim):
    """Deterministic synthetic init, PyTorch-like. Weights stored as (in, out)."""
    ks = jax.random.split(key, 8)

    def lin(kw, kb, fan_in, fan_out):
        bound = 1.0 / np.sqrt(fan_in)
        w = jax.random.uniform(kw, (fan_in, fan_out), jnp.float32, -bound, bound)
        b = jax.random.uniform(kb, (1, fan_out), jnp.float32, -bound, bound)
        return w, b

    w1, b1 = lin(ks[0], ks[1], state_dim, mid_dim)
    w2, b2 = lin(ks[2], ks[3], mid_dim, mid_dim)
    w3, b3 = lin(ks[4], ks[5], mid_dim, mid_dim)
    w4, b4 = lin(ks[6], ks[7], mid_dim, action_dim)
    # a_logstd exists in the module but is unused by forward().
    a_logstd = jnp.zeros((1, action_dim), jnp.float32) - 0.5
    return {"w1": w1, "b1": b1, "w2": w2, "b2": b2,
            "w3": w3, "b3": b3, "w4": w4, "b4": b4,
            "a_logstd": a_logstd}


def prepare_kernel_params(p):
    """Pad hidden/output dims to 128 lanes, cast weights to bf16, pack biases."""
    state_dim, mid_dim = p["w1"].shape
    action_dim = p["w4"].shape[1]
    midp = _round_up(mid_dim, _LANE)
    outp = _round_up(action_dim, _LANE)
    pw = max(midp, outp)

    def padw(w, shape):
        pads = [(0, s - d) for d, s in zip(w.shape, shape)]
        return jnp.pad(w, pads).astype(jnp.bfloat16)

    bias = jnp.zeros((8, pw), jnp.float32)
    bias = bias.at[0, :mid_dim].set(p["b1"][0])
    bias = bias.at[1, :mid_dim].set(p["b2"][0])
    bias = bias.at[2, :mid_dim].set(p["b3"][0])
    bias = bias.at[3, :action_dim].set(p["b4"][0])

    return {
        "w1": padw(p["w1"], (state_dim, midp)),
        "w2": padw(p["w2"], (midp, midp)),
        "w3": padw(p["w3"], (midp, midp)),
        "w4": padw(p["w4"], (midp, outp)),
        "bias": bias,
        "action_dim": action_dim,
    }


def reference_forward(state, p):
    """Pure-JAX f32 reference of ActorPPO.forward."""
    h = jnp.maximum(state @ p["w1"] + p["b1"], 0.0)
    h = jnp.maximum(h @ p["w2"] + p["b2"], 0.0)
    h = h @ p["w3"] + p["b3"]
    h = h * jnp.clip(h + 3.0, 0.0, 6.0) / 6.0
    return jnp.tanh(h @ p["w4"] + p["b4"])


if __name__ == "__main__":
    key = jax.random.PRNGKey(0)
    batch, state_dim, mid_dim, action_dim = 16, 16, 32, 8

    kp, kx = jax.random.split(key)
    params = init_params(kp, state_dim, mid_dim, action_dim)
    kparams = prepare_kernel_params(params)
    state = jax.random.normal(kx, (batch, state_dim), jnp.float32)

    out = actor_ppo_forward(state, kparams)
    out = jax.block_until_ready(out)
    assert out.shape == (batch, action_dim)

    ref = reference_forward(state, params)
    # bf16 matmul operands / bf16 elementwise (v6e/v7x) / bf16 output on a
    # tanh-bounded result -> a few 1e-3..1e-2 absolute error.
    np.testing.assert_allclose(np.asarray(out.astype(jnp.float32)),
                               np.asarray(ref), rtol=3e-2, atol=3e-2)
    print("KERNEL_OK")
</pallas_src>

<mosaic_0001>
module attributes {stable_mosaic.version = 11 : i64} {
  func.func @actor_ppo_kernel(%arg0: i32, %arg1: memref<16x16xf32, #tpu.memory_space<vmem>>, %arg2: memref<16x128xbf16, #tpu.memory_space<vmem>>, %arg3: memref<128x128xbf16, #tpu.memory_space<vmem>>, %arg4: memref<128x128xbf16, #tpu.memory_space<vmem>>, %arg5: memref<128x128xbf16, #tpu.memory_space<vmem>>, %arg6: memref<8x128xf32, #tpu.memory_space<vmem>>, %arg7: memref<16x128xbf16, #tpu.memory_space<vmem>>) attributes {dimension_semantics = [#tpu.dimension_semantics<parallel>], iteration_bounds = array<i64: 1>, scalar_prefetch = 0 : i64, scratch_operands = 0 : i64, tpu.core_type = #tpu.core_type<tc>, window_params = [{transform_indices = @transform_0, window_bounds = array<i64: 16, 16>}, {pipeline_mode = #tpu.pipeline_mode<synchronous>, transform_indices = @transform_1, window_bounds = array<i64: 16, 128>}, {pipeline_mode = #tpu.pipeline_mode<synchronous>, transform_indices = @transform_2, window_bounds = array<i64: 128, 128>}, {pipeline_mode = #tpu.pipeline_mode<synchronous>, transform_indices = @transform_3, window_bounds = array<i64: 128, 128>}, {pipeline_mode = #tpu.pipeline_mode<synchronous>, transform_indices = @transform_4, window_bounds = array<i64: 128, 128>}, {pipeline_mode = #tpu.pipeline_mode<synchronous>, transform_indices = @transform_5, window_bounds = array<i64: 8, 128>}, {transform_indices = @transform_6, window_bounds = array<i64: 16, 128>}]} {
    %c0 = arith.constant 0 : index
    %c0_0 = arith.constant 0 : index
    %0 = vector.load %arg6[%c0, %c0_0] : memref<8x128xf32, #tpu.memory_space<vmem>>, vector<8x128xf32>
    %c0_1 = arith.constant 0 : index
    %c0_2 = arith.constant 0 : index
    %1 = vector.load %arg1[%c0_1, %c0_2] : memref<16x16xf32, #tpu.memory_space<vmem>>, vector<16x16xf32>
    %2 = arith.truncf %1 : vector<16x16xf32> to vector<16x16xbf16>
    %c0_3 = arith.constant 0 : index
    %c0_4 = arith.constant 0 : index
    %3 = vector.load %arg2[%c0_3, %c0_4] : memref<16x128xbf16, #tpu.memory_space<vmem>>, vector<16x128xbf16>
    %cst = arith.constant dense<0.000000e+00> : vector<16x128xf32>
    %4 = tpu.matmul %2, %3, %cst {dimension_numbers = #tpu.dot_dimension_numbers<[1], [0], [0], [1], [0, 0, 1, 1], [], []>} : vector<16x16xbf16>, vector<16x128xbf16>, vector<16x128xf32> -> vector<16x128xf32>
    %5 = vector.extract_strided_slice %0 {offsets = [0, 0], sizes = [1, 128], strides = [1, 1]} : vector<8x128xf32> to vector<1x128xf32>
    %6 = vector.broadcast %5 : vector<1x128xf32> to vector<16x128xf32>
    %7 = arith.addf %4, %6 : vector<16x128xf32>
    %cst_5 = arith.constant 0.000000e+00 : f32
    %8 = vector.broadcast %cst_5 : f32 to vector<16x128xf32>
    %9 = arith.maximumf %7, %8 : vector<16x128xf32>
    %10 = arith.truncf %9 : vector<16x128xf32> to vector<16x128xbf16>
    %c0_6 = arith.constant 0 : index
    %c0_7 = arith.constant 0 : index
    %11 = vector.load %arg3[%c0_6, %c0_7] : memref<128x128xbf16, #tpu.memory_space<vmem>>, vector<128x128xbf16>
    %cst_8 = arith.constant dense<0.000000e+00> : vector<16x128xf32>
    %12 = tpu.matmul %10, %11, %cst_8 {dimension_numbers = #tpu.dot_dimension_numbers<[1], [0], [0], [1], [0, 0, 1, 1], [], []>} : vector<16x128xbf16>, vector<128x128xbf16>, vector<16x128xf32> -> vector<16x128xf32>
    %13 = vector.extract_strided_slice %0 {offsets = [1, 0], sizes = [1, 128], strides = [1, 1]} : vector<8x128xf32> to vector<1x128xf32>
    %14 = vector.broadcast %13 : vector<1x128xf32> to vector<16x128xf32>
    %15 = arith.addf %12, %14 : vector<16x128xf32>
    %cst_9 = arith.constant 0.000000e+00 : f32
    %16 = vector.broadcast %cst_9 : f32 to vector<16x128xf32>
    %17 = arith.maximumf %15, %16 : vector<16x128xf32>
    %18 = arith.truncf %17 : vector<16x128xf32> to vector<16x128xbf16>
    %c0_10 = arith.constant 0 : index
    %c0_11 = arith.constant 0 : index
    %19 = vector.load %arg4[%c0_10, %c0_11] : memref<128x128xbf16, #tpu.memory_space<vmem>>, vector<128x128xbf16>
    %cst_12 = arith.constant dense<0.000000e+00> : vector<16x128xf32>
    %20 = tpu.matmul %18, %19, %cst_12 {dimension_numbers = #tpu.dot_dimension_numbers<[1], [0], [0], [1], [0, 0, 1, 1], [], []>} : vector<16x128xbf16>, vector<128x128xbf16>, vector<16x128xf32> -> vector<16x128xf32>
    %21 = vector.extract_strided_slice %0 {offsets = [2, 0], sizes = [1, 128], strides = [1, 1]} : vector<8x128xf32> to vector<1x128xf32>
    %22 = vector.broadcast %21 : vector<1x128xf32> to vector<16x128xf32>
    %23 = arith.addf %20, %22 : vector<16x128xf32>
    %cst_13 = arith.constant 3.000000e+00 : f32
    %24 = vector.broadcast %cst_13 : f32 to vector<16x128xf32>
    %25 = arith.addf %23, %24 : vector<16x128xf32>
    %cst_14 = arith.constant 0.000000e+00 : f32
    %cst_15 = arith.constant 6.000000e+00 : f32
    %26 = vector.broadcast %cst_14 : f32 to vector<16x128xf32>
    %27 = arith.maximumf %26, %25 : vector<16x128xf32>
    %28 = vector.broadcast %cst_15 : f32 to vector<16x128xf32>
    %29 = arith.minimumf %28, %27 : vector<16x128xf32>
    %30 = arith.mulf %23, %29 : vector<16x128xf32>
    %cst_16 = arith.constant 0.166666672 : f32
    %31 = vector.broadcast %cst_16 : f32 to vector<16x128xf32>
    %32 = arith.mulf %30, %31 : vector<16x128xf32>
    %33 = arith.truncf %32 : vector<16x128xf32> to vector<16x128xbf16>
    %c0_17 = arith.constant 0 : index
    %c0_18 = arith.constant 0 : index
    %34 = vector.load %arg5[%c0_17, %c0_18] : memref<128x128xbf16, #tpu.memory_space<vmem>>, vector<128x128xbf16>
    %cst_19 = arith.constant dense<0.000000e+00> : vector<16x128xf32>
    %35 = tpu.matmul %33, %34, %cst_19 {dimension_numbers = #tpu.dot_dimension_numbers<[1], [0], [0], [1], [0, 0, 1, 1], [], []>} : vector<16x128xbf16>, vector<128x128xbf16>, vector<16x128xf32> -> vector<16x128xf32>
    %36 = vector.extract_strided_slice %0 {offsets = [3, 0], sizes = [1, 128], strides = [1, 1]} : vector<8x128xf32> to vector<1x128xf32>
    %37 = vector.broadcast %36 : vector<1x128xf32> to vector<16x128xf32>
    %38 = arith.addf %35, %37 : vector<16x128xf32>
    %39 = math.tanh %38 : vector<16x128xf32>
    %40 = arith.truncf %39 : vector<16x128xf32> to vector<16x128xbf16>
    %c0_20 = arith.constant 0 : index
    %c0_21 = arith.constant 0 : index
    %41 = vector.load %arg7[%c0_20, %c0_21] : memref<16x128xbf16, #tpu.memory_space<vmem>>, vector<16x128xbf16>
    tpu.vector_store %arg7[%c0_20, %c0_21], %40 {strides = array<i32>} : memref<16x128xbf16, #tpu.memory_space<vmem>>, vector<16x128xbf16>,
    return
  }
  func.func @transform_0(%arg0: i32) -> (i32, i32) {
    %c0_i32 = arith.constant 0 : i32
    %c0_i32_0 = arith.constant 0 : i32
    return %arg0, %c0_i32 : i32, i32
  }
  func.func @transform_1(%arg0: i32) -> (i32, i32) {
    %c0_i32 = arith.constant 0 : i32
    %c0_i32_0 = arith.constant 0 : i32
    %c0_i32_1 = arith.constant 0 : i32
    return %c0_i32, %c0_i32_0 : i32, i32
  }
  func.func @transform_2(%arg0: i32) -> (i32, i32) {
    %c0_i32 = arith.constant 0 : i32
    %c0_i32_0 = arith.constant 0 : i32
    %c0_i32_1 = arith.constant 0 : i32
    return %c0_i32, %c0_i32_0 : i32, i32
  }
  func.func @transform_3(%arg0: i32) -> (i32, i32) {
    %c0_i32 = arith.constant 0 : i32
    %c0_i32_0 = arith.constant 0 : i32
    %c0_i32_1 = arith.constant 0 : i32
    return %c0_i32, %c0_i32_0 : i32, i32
  }
  func.func @transform_4(%arg0: i32) -> (i32, i32) {
    %c0_i32 = arith.constant 0 : i32
    %c0_i32_0 = arith.constant 0 : i32
    %c0_i32_1 = arith.constant 0 : i32
    return %c0_i32, %c0_i32_0 : i32, i32
  }
  func.func @transform_5(%arg0: i32) -> (i32, i32) {
    %c0_i32 = arith.constant 0 : i32
    %c0_i32_0 = arith.constant 0 : i32
    %c0_i32_1 = arith.constant 0 : i32
    return %c0_i32, %c0_i32_0 : i32, i32
  }
  func.func @transform_6(%arg0: i32) -> (i32, i32) {
    %c0_i32 = arith.constant 0 : i32
    %c0_i32_0 = arith.constant 0 : i32
    return %arg0, %c0_i32 : i32, i32
  }
}

</mosaic_0001>

<bundles_post_ra>
// kernel: tpu_custom_call.1
= control target key start
LH: loop header
LB: loop body
LE: loop exit
PB: predicated region body
PF: predicated region fallthrough
CT: control target
= control target key end

     0   :  { %11 = vsyncpa [#allocation3], 0  ;;  %s956_s0 = inlined_call_operand.hbm [shape: f32[16,16], index: 0, kind: input, shape index: {}]   ;;  %s957_s1 = inlined_call_operand.hbm [shape: bf16[16,128], index: 1, kind: input, shape index: {}]   ;;  %s958_s2 = inlined_call_operand.hbm [shape: bf16[128,128], index: 2, kind: input, shape index: {}]   ;;  %s959_s3 = inlined_call_operand.hbm [shape: bf16[128,128], index: 3, kind: input, shape index: {}]   ;;  %s960_s4 = inlined_call_operand.hbm [shape: bf16[128,128], index: 4, kind: input, shape index: {}]   ;;  %s961_s5 = inlined_call_operand.vmem [shape: f32[8,128], index: 5, kind: input, shape index: {}]   ;;  %s962_s6 = inlined_call_operand.hbm [shape: bf16[16,128], index: 6, kind: output, shape index: {}]  }
   0x1   :  { %12 = vsyncpa [#allocation6], 0 }
   0x2   :  { %13 = vsyncpa [#allocation9], 0 }
   0x3   :  { %14 = vsyncpa [#allocation4], 0  ;;  %s828_s21 = smov [#allocation5]  }
   0x4   :  { %s32_s22 = sshll.u32 %s828_s21, 4  ;;  %s33_s22 = int_to_ptr.vmem [resolvable:$true] %s32_s22 }
   0x5   :  { %s708_s23 = scalar_lea.vmem %s33_s22, 128  ;;  %p713_p1 = scmp.lt.s32.totalorder %s33_s22, %s33_s22 }
   0x6   :  { %p709_p0 = scmp.ne.s32.totalorder %s33_s22, %s708_s23  ;;  %p714_p2 = scmp.lt.s32.totalorder %s708_s23, %s708_s23 }
   0x8   :  { %p715_p3 = por %p714_p2, %p713_p1 }
   0xa   :  { %p716_p4 = pnand %p715_p3, %p709_p0 }
   0xc   :  { %719 = shalt.err (!%p716_p4)
}
   0xd   :  { %s829_s24 = smov 64   ;;  %s830_s25 = smov 4  }
   0xe   :  { %38 = dma.hbm_to_vmem [thread:$0]  %s957_s1, 128, %s33_s22, [#allocation6], %s829_s24, %s829_s24, %s830_s25  }
   0xf   :  { %s831_s28 = smov [#allocation8]   ;;  %s832_s30 = smov [#allocation2]  }
  0x10   :  { %s56_s29 = sshll.u32 %s831_s28, 4  ;;  %s20_s7 = sshll.u32 %s832_s30, 4  ;;  %s57_s29 = int_to_ptr.vmem [resolvable:$true] %s56_s29  ;;  %s21_s7 = int_to_ptr.vmem [resolvable:$true] %s20_s7 }
  0x11   :  { %s728_s8 = scalar_lea.vmem %s57_s29, 1024  ;;  %p733_p6 = scmp.lt.s32.totalorder %s57_s29, %s57_s29 }
  0x12   :  { %p729_p5 = scmp.ne.s32.totalorder %s57_s29, %s728_s8  ;;  %p734_p7 = scmp.lt.s32.totalorder %s728_s8, %s728_s8 }
  0x14   :  { %p735_p8 = por %p734_p7, %p733_p6 }
  0x16   :  { %p736_p9 = pnand %p735_p8, %p729_p5 }
  0x18   :  { %739 = shalt.err (!%p736_p9)
}
  0x19   :  { %62 = dma.hbm_to_vmem [thread:$0]  %s959_s3, 1024, %s57_s29, [#allocation9], %s829_s24, %s829_s24, %s830_s25  }
  0x1a   :  { %s748_s1 = scalar_lea.vmem %s21_s7, 256  ;;  %p753_p11 = scmp.lt.s32.totalorder %s21_s7, %s21_s7 }
  0x1b   :  { %p749_p10 = scmp.ne.s32.totalorder %s21_s7, %s748_s1  ;;  %p754_p12 = scmp.lt.s32.totalorder %s748_s1, %s748_s1 }
  0x1d   :  { %p755_p13 = por %p754_p12, %p753_p11 }
  0x1f   :  { %p756_p0 = pnand %p755_p13, %p749_p10 }
  0x21   :  { %759 = shalt.err (!%p756_p0)
}
  0x22   :  { %s833_s11 = smov 128   ;;  %s834_s12 = smov 8  }
  0x23   :  { %26 = dma.hbm_to_vmem [thread:$0]  %s956_s0, 256, %s21_s7, [#allocation3], %s833_s11, %s833_s11, %s834_s12  }
  0x24   :  { %s835_s15 = smov [#allocation7]   ;;  %s836_s17 = smov [#allocation10]  }
  0x25   :  { %s44_s16 = sshll.u32 %s835_s15, 4  ;;  %s68_s18 = sshll.u32 %s836_s17, 4  ;;  %s45_s16 = int_to_ptr.vmem [resolvable:$true] %s44_s16  ;;  %s69_s18 = int_to_ptr.vmem [resolvable:$true] %s68_s18 }
  0x26   :  { %s768_s3 = scalar_lea.vmem %s45_s16, 1024  ;;  %p773_p2 = scmp.lt.s32.totalorder %s45_s16, %s45_s16 }
  0x27   :  { %p769_p1 = scmp.ne.s32.totalorder %s45_s16, %s768_s3  ;;  %p774_p3 = scmp.lt.s32.totalorder %s768_s3, %s768_s3 }
  0x29   :  { %p775_p4 = por %p774_p3, %p773_p2 }
  0x2b   :  { %p776_p5 = pnand %p775_p4, %p769_p1 }
  0x2d   :  { %779 = shalt.err (!%p776_p5)
}
  0x2e   :  { %50 = dma.hbm_to_vmem [thread:$0]  %s958_s2, 1024, %s45_s16, [#allocation6], %s829_s24, %s829_s24, %s830_s25  }
  0x2f   :  { %s788_s0 = scalar_lea.vmem %s69_s18, 1024  ;;  %p793_p7 = scmp.lt.s32.totalorder %s69_s18, %s69_s18 }
  0x30   :  { %p789_p6 = scmp.ne.s32.totalorder %s69_s18, %s788_s0  ;;  %p794_p8 = scmp.lt.s32.totalorder %s788_s0, %s788_s0 }
  0x32   :  { %p795_p9 = por %p794_p8, %p793_p7 }
  0x34   :  { %p796_p10 = pnand %p795_p9, %p789_p6 }
  0x36   :  { %799 = shalt.err (!%p796_p10)
}
  0x37   :  { %74 = dma.hbm_to_vmem [thread:$0]  %s960_s4, 1024, %s69_s18, [#allocation9], %s829_s24, %s829_s24, %s830_s25  }
  0x38   :  { %820 = dma.done.wait [#allocation3], 256  }
  0x39   :  { %821 = vsyncadd [#allocation3], 4294967040 }
  0x3a   :  { %822 = dma.done.wait [#allocation6], 1152  }
  0x3b   :  { %823 = vsyncadd [#allocation6], 4294966144 }
  0x3c   :  { %824 = dma.done.wait [#allocation9], 2048  }
  0x3d   :  { %825 = vsyncadd [#allocation9], 4294965248  ;;  %v837_v0 = vmov 0.0   ;;  %vm838_vm0 = vmmov 0   ;;  %v671_v1 = vld [vmem:[#allocation5] sm:$0xff]   ;;  %v94_v2 = vld [vmem:[#allocation2] sm:$0xff]  ;;  %v99_v18 = vlaneseq }
  0x3e   :  { %593 = vmatprep.subr.bf16.mxu0 %v837_v0  ;;  %595 = vmatprep.mubr.msk.bf16.mxu0 %vm838_vm0, %v837_v0  ;;  %v95_v3 = vld [vmem:[#allocation2 + $0x8] sm:$0xff]  ;;  %vm109_vm1 = vcmask 130048   ;;  %v672_v5 = vld [vmem:[#allocation7 + $0x38] sm:$0xff]   ;;  %v674_v7 = vld [vmem:[#allocation7 + $0x28] sm:$0xff]  }
  0x3f   :  { %599 = vmatprep.subr.bf16.mxu1 %v837_v0  ;;  %615 = vmatprep.mubr.msk.bf16.mxu1 %vm838_vm0, %v837_v0  ;;  %v96_v4 = vpack.c.bf16 %v95_v3, %v94_v2  ;;  %v673_v6 = vld [vmem:[#allocation7 + $0x30] sm:$0xff]   ;;  %v675_v8 = vld [vmem:[#allocation7 + $0x20] sm:$0xff]   ;;  %v676_v9 = vld [vmem:[#allocation7 + $0x18] sm:$0xff]   ;;  %v924_v19 = vshrl.u32 %v99_v18, 7 }
  0x40   :  { %594 = vmatpush3.bf16.msra.mxu0 %v671_v1  ;;  %600 = vmatpush3.bf16.msra.mxu1 %v672_v5  ;;  %v677_v10 = vld [vmem:[#allocation7 + $0x10] sm:$0xff]   ;;  %v678_v11 = vld [vmem:[#allocation7 + $0x8] sm:$0xff]   ;;  %v679_v12 = vld [vmem:[#allocation7] sm:$0xff]  }
  0x41   :  { %619 = vmatprep.subr.bf16.mxu0 %v837_v0  ;;  %601 = vmatprep.subr.bf16.mxu1 %v837_v0  ;;  %v680_v13 = vld [vmem:[#allocation8 + $0x38] sm:$0xff]   ;;  %v681_v14 = vld [vmem:[#allocation8 + $0x30] sm:$0xff]   ;;  %v682_v15 = vld [vmem:[#allocation8 + $0x28] sm:$0xff]   ;;  %v101_v20 = vsub.s32 0, %v924_v19  ;;  %v175_v38 = vsub.s32 1, %v924_v19  ;;  %v287_v54 = vsub.s32 2, %v924_v19 }
  0x42   :  { %v683_v16 = vld [vmem:[#allocation8 + $0x20] sm:$0xff]   ;;  %v684_v17 = vld [vmem:[#allocation8 + $0x18] sm:$0xff]   ;;  %v930_v21 = vld [vmem:[%s961_s5] sm:$0xff]  ;;  %s839_s5 = smov [#allocation11]  }
  0x43   :  { %596 = vmatmul.mubr.msk.bf16.vlgmr.msra.gmra.mxu0 %vm109_vm1, %v96_v4  ;;  %v102_v22 = vrot.slane %v930_v21, %v101_v20  ;;  %v685_v32 = vld [vmem:[#allocation8 + $0x10] sm:$0xff]   ;;  %v686_v33 = vld [vmem:[#allocation8 + $0x8] sm:$0xff]   ;;  %v687_v34 = vld [vmem:[#allocation8] sm:$0xff]   ;;  %v176_v39 = vrot.slane %v930_v21, %v175_v38  ;;  %v288_v55 = vrot.slane %v930_v21, %v287_v54  ;;  %s515_s23 = sshll.u32 %s839_s5, 4  ;;  %s516_s23 = int_to_ptr.vmem [resolvable:$true] %s515_s23 }
  0x44   :  { %635 = vmatprep.mubr.msk.bf16.mxu0 %vm838_vm0, %v837_v0  ;;  %602 = vmatpush3.bf16.msra.mxu1 %v673_v6  ;;  %v688_v35 = vld [vmem:[#allocation10 + $0x38] sm:$0xff]   ;;  %v689_v36 = vld [vmem:[#allocation10 + $0x30] sm:$0xff]   ;;  %v690_v37 = vld [vmem:[#allocation10 + $0x28] sm:$0xff]   ;;  %s800_s26 = scalar_lea.vmem %s516_s23, 128  ;;  %p805_p12 = scmp.lt.s32.totalorder %s516_s23, %s516_s23 }
  0x45   :  { %603 = vmatprep.subr.bf16.mxu1 %v837_v0  ;;  %620 = vmatpush3.bf16.msra.mxu0 %v680_v13  ;;  %v691_v49 = vld [vmem:[#allocation10 + $0x20] sm:$0xff]   ;;  %v692_v50 = vld [vmem:[#allocation10 + $0x18] sm:$0xff]   ;;  %v693_v51 = vld [vmem:[#allocation10 + $0x10] sm:$0xff]   ;;  %p801_p11 = scmp.ne.s32.totalorder %s516_s23, %s800_s26  ;;  %p806_p13 = scmp.lt.s32.totalorder %s800_s26, %s800_s26 }
  0x46   :  { %621 = vmatprep.subr.bf16.mxu0 %v837_v0  ;;  %v694_v52 = vld [vmem:[#allocation10 + $0x8] sm:$0xff]   ;;  %v695_v53 = vld [vmem:[#allocation10] sm:$0xff]  }
  0x47   :  { %p807_p0 = por %p806_p13, %p805_p12 }
  0x48   :  { %604 = vmatpush3.bf16.msra.mxu1 %v674_v7 }
  0x49   :  { %605 = vmatprep.subr.bf16.mxu1 %v837_v0  ;;  %622 = vmatpush3.bf16.msra.mxu0 %v681_v14  ;;  %p808_p1 = pnand %p807_p0, %p801_p11 }
  0x4a   :  { %623 = vmatprep.subr.bf16.mxu0 %v837_v0 }
  0x4c   :  { %606 = vmatpush3.bf16.msra.mxu1 %v675_v8 }
  0x4d   :  { %607 = vmatprep.subr.bf16.mxu1 %v837_v0  ;;  %624 = vmatpush3.bf16.msra.mxu0 %v682_v15 }
  0x4e   :  { %625 = vmatprep.subr.bf16.mxu0 %v837_v0 }
  0x50   :  { %608 = vmatpush3.bf16.msra.mxu1 %v676_v9  ;;  %v407_v9 = vsub.s32 3, %v924_v19 }
  0x51   :  { %609 = vmatprep.subr.bf16.mxu1 %v837_v0  ;;  %626 = vmatpush3.bf16.msra.mxu0 %v683_v16 }
  0x52   :  { %627 = vmatprep.subr.bf16.mxu0 %v837_v0 }
  0x54   :  { %610 = vmatpush3.bf16.msra.mxu1 %v677_v10  ;;  %v408_v10 = vrot.slane %v930_v21, %v407_v9 }
  0x55   :  { %611 = vmatprep.subr.bf16.mxu1 %v837_v0  ;;  %628 = vmatpush3.bf16.msra.mxu0 %v684_v17 }
  0x56   :  { %629 = vmatprep.subr.bf16.mxu0 %v837_v0 }
  0x58   :  { %612 = vmatpush3.bf16.msra.mxu1 %v678_v11 }
  0x59   :  { %613 = vmatprep.subr.bf16.mxu1 %v837_v0  ;;  %630 = vmatpush3.bf16.msra.mxu0 %v685_v32 }
  0x5a   :  { %631 = vmatprep.subr.bf16.mxu0 %v837_v0 }
  0x5c   :  { %614 = vmatpush3.bf16.msra.mxu1 %v679_v12 }
  0x5d   :  { %639 = vmatprep.subr.bf16.mxu1 %v837_v0  ;;  %632 = vmatpush3.bf16.msra.mxu0 %v686_v33 }
  0x5e   :  { %633 = vmatprep.subr.bf16.mxu0 %v837_v0 }
  0x61   :  { %634 = vmatpush3.bf16.msra.mxu0 %v687_v34 }
 0x103   :  { %v147_v23 = vpop.f32.mrf.mxu0 }
 0x104   :  { %v148_v25 = vadd.f32 %v147_v23, %v102_v22 }
 0x105   :  { %v597_v24 = vpop.f32.mrf.mxu0 }
 0x106   :  { %v154_v29 = vmax.f32 %v148_v25, 0.0 }
 0x107   :  { %v150_v26 = vpop.f32.mrf.mxu0 }
 0x108   :  { %v151_v27 = vadd.f32 %v150_v26, %v102_v22 }
 0x109   :  { %v598_v28 = vpop.f32.mrf.mxu0 }
 0x10a   :  { %v155_v30 = vmax.f32 %v151_v27, 0.0 }
 0x10c   :  { %v156_v31 = vpack.c.bf16 %v155_v30, %v154_v29 }
 0x10e   :  { %616 = vmatmul.mubr.bf16.vlgmr.msra.gmra.mxu1 %v156_v31 }
 0x10f   :  { %655 = vmatprep.mubr.msk.bf16.mxu1 %vm838_vm0, %v837_v0  ;;  %640 = vmatpush3.bf16.msra.mxu1 %v688_v35 }
 0x110   :  { %641 = vmatprep.subr.bf16.mxu1 %v837_v0 }
 0x113   :  { %642 = vmatpush3.bf16.msra.mxu1 %v689_v36 }
 0x114   :  { %643 = vmatprep.subr.bf16.mxu1 %v837_v0 }
 0x117   :  { %644 = vmatpush3.bf16.msra.mxu1 %v690_v37 }
 0x118   :  { %645 = vmatprep.subr.bf16.mxu1 %v837_v0 }
 0x11b   :  { %646 = vmatpush3.bf16.msra.mxu1 %v691_v49 }
 0x11c   :  { %647 = vmatprep.subr.bf16.mxu1 %v837_v0 }
 0x11f   :  { %648 = vmatpush3.bf16.msra.mxu1 %v692_v50 }
 0x120   :  { %649 = vmatprep.subr.bf16.mxu1 %v837_v0 }
 0x123   :  { %650 = vmatpush3.bf16.msra.mxu1 %v693_v51 }
 0x124   :  { %651 = vmatprep.subr.bf16.mxu1 %v837_v0 }
 0x127   :  { %652 = vmatpush3.bf16.msra.mxu1 %v694_v52 }
 0x128   :  { %653 = vmatprep.subr.bf16.mxu1 %v837_v0 }
 0x12b   :  { %654 = vmatpush3.bf16.msra.mxu1 %v695_v53 }
 0x1ce   :  { %v259_v40 = vpop.f32.mrf.mxu1 }
 0x1cf   :  { %v260_v42 = vadd.f32 %v259_v40, %v176_v39 }
 0x1d0   :  { %v617_v41 = vpop.f32.mrf.mxu1 }
 0x1d1   :  { %v266_v46 = vmax.f32 %v260_v42, 0.0 }
 0x1d2   :  { %v262_v43 = vpop.f32.mrf.mxu1 }
 0x1d3   :  { %v263_v44 = vadd.f32 %v262_v43, %v176_v39 }
 0x1d4   :  { %v618_v45 = vpop.f32.mrf.mxu1 }
 0x1d5   :  { %v267_v47 = vmax.f32 %v263_v44, 0.0 }
 0x1d7   :  { %v268_v48 = vpack.c.bf16 %v267_v47, %v266_v46 }
 0x1d9   :  { %636 = vmatmul.mubr.bf16.vlgmr.msra.gmra.mxu0 %v268_v48 }
 0x299   :  { %v371_v56 = vpop.f32.mrf.mxu0 }
 0x29a   :  { %v372_v57 = vadd.f32 %v371_v56, %v288_v55 }
 0x29b   :  { %v637_v58 = vpop.f32.mrf.mxu0 }
 0x29c   :  { %v378_v59 = vadd.f32 3.0, %v372_v57 }
 0x29d   :  { %v374_v60 = vpop.f32.mrf.mxu0 }
 0x29e   :  { %v380_v61 = vmax.f32 %v378_v59, 0.0  ;;  %v375_v62 = vadd.f32 %v374_v60, %v288_v55 }
 0x29f   :  { %v638_v63 = vpop.f32.mrf.mxu0 }
 0x2a0   :  { %v382_v1 = vmin.f32 %v380_v61, 6.0  ;;  %v379_v2 = vadd.f32 3.0, %v375_v62 }
 0x2a2   :  { %v381_v3 = vmax.f32 %v379_v2, 0.0  ;;  %v384_v4 = vmul.f32 %v382_v1, %v372_v57 }
 0x2a4   :  { %v383_v5 = vmin.f32 %v381_v3, 6.0  ;;  %v386_v6 = vmul.f32 0.16666667, %v384_v4 }
 0x2a6   :  { %v385_v0 = vmul.f32 %v383_v5, %v375_v62 }
 0x2a8   :  { %v387_v7 = vmul.f32 0.16666667, %v385_v0 }
 0x2aa   :  { %v388_v8 = vpack.c.bf16 %v387_v7, %v386_v6 }
 0x2ac   :  { %656 = vmatmul.mubr.bf16.vlgmr.msra.gmra.mxu1 %v388_v8 }
 0x36c   :  { %v491_v11 = vpop.f32.mrf.mxu1 }
 0x36d   :  { %v492_v12 = vadd.f32 %v491_v11, %v408_v10 }
 0x36e   :  { %v657_v13 = vpop.f32.mrf.mxu1 }
 0x36f   :  { %696 = vtanh.f32 %v492_v12 }
 0x370   :  { %v494_v14 = vpop.f32.mrf.mxu1 }
 0x371   :  { %v495_v15 = vadd.f32 %v494_v14, %v408_v10 }
 0x372   :  { %v658_v16 = vpop.f32.mrf.mxu1 }
 0x373   :  { %698 = vtanh.f32 %v495_v15 }
 0x37c   :  { %v697_v17 = vpop.eup %696 }
 0x380   :  { %v699_v18 = vpop.eup %698 }
 0x381   :  { %v562_v20 = vpack.c.bf16 %v699_v18, %v697_v17 }
 0x383   :  { %563 = vst [vmem:[#allocation11] sm:$0xff] %v562_v20  }
 0x384   :  { %811 = shalt.err (!%p808_p1)
}
 0x385   :  { %521 = dma.vmem_to_hbm [thread:$0]  %s516_s23, 128, %s962_s6, [#allocation4], %s829_s24, %s829_s24, %s830_s25  }
 0x386   :  { %826 = dma.done.wait [#allocation4], 128  }
 0x387   :  { %827 = vsyncadd [#allocation4], 4294967168 }
 0x388   :  { %525 = vsyncpa [#allocation3], 1 }
 0x389   :  { %526 = vsyncpa [#allocation6], 1 }
 0x38a   :  { %527 = vsyncpa [#allocation9], 1 }
 0x38b   :  { %528 = vsyncpa [#allocation4], 1 }

</bundles_post_ra>
